<compile_context>
chip_gen: v6e
topology: v6e:2x2x1
jax: 0.10.0
libtpu: 0.0.40
codegen_flags: <defaults>
</compile_context>

<pallas_src>
import functools

import jax
import jax.numpy as jnp
import numpy as np
from jax import lax
from jax.experimental import pallas as pl
from jax.experimental.pallas import tpu as pltpu


def _proto_loss_kernel(x_ref, proto_ref, psq_ref, label_ref, out_ref, *,
                       S, P, n_shot, TILE_B):
    tile = pl.program_id(0)

    x = x_ref[...]                                   # (TILE_B, E) native dtype
    proto = proto_ref[...]                           # (S, E)     native dtype
    p_sq = psq_ref[...]                              # (1, S)     f32
    lbl = label_ref[...]                             # (TILE_B, 1) int32

    # q.p on the MXU (bf16 operands allowed; f32 accumulation).
    cross = lax.dot_general(x, proto, (((1,), (1,)), ((), ())),
                            preferred_element_type=jnp.float32)   # (TILE_B, S)

    xf = x.astype(jnp.float32)
    q_sq = jnp.sum(xf * xf, axis=1, keepdims=True)                # (TILE_B, 1)

    # Euclidean distance epilogue kept fully in f32.
    d2 = jnp.maximum(q_sq + p_sq - 2.0 * cross, 0.0)
    logit = -jnp.sqrt(d2)                                         # (TILE_B, S)

    # Episode structure rebuilt from the *global* row index (no avg matrix,
    # no label_metric input): global row r is a query row of speaker c iff
    # c*P + n_shot <= r < (c+1)*P.  Out-of-bounds rows of a ragged last tile
    # get an all-false mask and contribute nothing.
    row = lax.broadcasted_iota(jnp.int32, (TILE_B, S), 0) + tile * TILE_B
    col = lax.broadcasted_iota(jnp.int32, (TILE_B, S), 1)
    is_target = (row >= col * P + n_shot) & (row < (col + 1) * P)  # bool
    qmask = jnp.sum(jnp.where(is_target, 1.0, 0.0), axis=1, keepdims=True)
    is_query = qmask > 0.5                                         # (TILE_B, 1)

    # Cross-entropy partial sum over this tile's query rows (stable LSE).
    picked = jnp.sum(jnp.where(is_target, logit, 0.0), axis=1, keepdims=True)
    m = jnp.max(logit, axis=1, keepdims=True)
    lse = m + jnp.log(jnp.sum(jnp.exp(logit - m), axis=1, keepdims=True))
    loss_sum = jnp.sum(jnp.where(is_query, lse - picked, 0.0),
                       axis=0, keepdims=True)                      # (1, 1)

    # Top-1 prediction: first column achieving the max (torch.topk tie-break),
    # compared against the raw label values (faithful to the module).
    pred = jnp.min(jnp.where(logit >= m, col, S), axis=1, keepdims=True)
    correct_sum = jnp.sum(jnp.where(is_query & (pred == lbl), 1.0, 0.0),
                          axis=0, keepdims=True)                   # (1, 1)

    # Lane-dense partial output row: lane 0 = loss partial, lane 1 = correct.
    lane = lax.broadcasted_iota(jnp.int32, (1, 128), 1)
    row_out = (jnp.where(lane == 0, loss_sum, 0.0)
               + jnp.where(lane == 1, correct_sum, 0.0))           # (1, 128)
    out_ref[...] = row_out.reshape(1, 1, 128)


def _choose_tile(batch, row_bytes):
    """Batch tile: multiple of 8 (or full batch), ~2 MiB of x per buffer."""
    if batch <= 8:
        return batch
    rows = max(8, min(1024, (2 << 20) // max(1, row_bytes)))
    return min(batch, (rows // 8) * 8)


@functools.partial(jax.jit,
                   static_argnames=("nb_sample_per_speaker", "nb_speaker",
                                    "n_shot"))
def _proto_loss_call(x, label, *, nb_sample_per_speaker, nb_speaker, n_shot):
    batch, E = x.shape
    P, S = nb_sample_per_speaker, nb_speaker
    assert batch == S * P
    Q = S * (P - n_shot)
    assert Q > 0

    # Tiny wrapper-side XLA ops (per review): prototype mean and its squared
    # norm — a few S*E elements, computed once, passed as resident blocks.
    x3 = x.reshape(S, P, E)
    proto_f32 = jnp.mean(x3[:, :n_shot, :].astype(jnp.float32), axis=1)  # (S,E)
    p_sq = jnp.sum(proto_f32 * proto_f32, axis=1).reshape(1, S)          # (1,S)
    proto_in = proto_f32.astype(x.dtype)    # bf16 operands go straight to MXU

    itemsize = int(jnp.dtype(x.dtype).itemsize)
    tile_b = _choose_tile(batch, E * itemsize)
    num_tiles = (batch + tile_b - 1) // tile_b

    label2d = label.reshape(batch, 1).astype(jnp.int32)

    kernel = functools.partial(_proto_loss_kernel, S=S, P=P, n_shot=n_shot,
                               TILE_B=tile_b)

    cost = pl.CostEstimate(
        flops=int(2 * batch * S * E + 12 * batch * S),
        transcendentals=int(batch * (S + 2)),
        bytes_accessed=int(batch * E * itemsize + batch * 4
                           + S * E * itemsize + S * 4
                           + num_tiles * 128 * 4))

    out = pl.pallas_call(
        kernel,
        out_shape=jax.ShapeDtypeStruct((num_tiles, 1, 128), jnp.float32),
        grid_spec=pltpu.PrefetchScalarGridSpec(
            num_scalar_prefetch=0,
            grid=(num_tiles,),
            in_specs=[
                pl.BlockSpec((tile_b, E), lambda i: (i, 0)),   # x tile (pipelined)
                pl.BlockSpec((S, E), lambda i: (0, 0)),        # prototype (resident)
                pl.BlockSpec((1, S), lambda i: (0, 0)),        # ||p||^2 (resident)
                pl.BlockSpec((tile_b, 1), lambda i: (i, 0)),   # labels tile
            ],
            out_specs=pl.BlockSpec((1, 1, 128), lambda i: (i, 0, 0)),
        ),
        compiler_params=pltpu.CompilerParams(
            dimension_semantics=("parallel",)),   # both TCs on v7x
        cost_estimate=cost,
    )(x, proto_in, p_sq, label2d)

    partials = out[:, 0, :]                                       # (num_tiles, 128)
    loss = jnp.sum(partials[:, 0]) * jnp.float32(1.0 / Q)
    prec1 = jnp.sum(partials[:, 1]) * jnp.float32(100.0 / Q)
    return loss, prec1


def prototypical_euclidean_loss(x, label, *, nb_sample_per_speaker, nb_speaker,
                                n_shot, check_labels=False):
    """Forward pass of the prototypical (Euclidean) loss.

    check_labels=True reproduces the module's host-side label-consistency
    assert (forces a device->host sync — keep it off in the training loop).
    """
    if check_labels:
        lab_np = np.asarray(label).reshape(nb_speaker, nb_sample_per_speaker)
        for i in range(nb_sample_per_speaker - 1):
            assert np.all(lab_np[:, i] == lab_np[:, i + 1]), \
                'label should be same for each speaker'
    return _proto_loss_call(x, label,
                            nb_sample_per_speaker=nb_sample_per_speaker,
                            nb_speaker=nb_speaker, n_shot=n_shot)


def _reference(x, label, *, nb_sample_per_speaker, nb_speaker, n_shot):
    """Pure-JAX reference mirroring the PyTorch forward."""
    P, S = nb_sample_per_speaker, nb_speaker
    _, E = x.shape
    Q = S * (P - n_shot)
    label_q = label.reshape(S, P)[:, n_shot:].reshape(Q)
    x3 = x.reshape(S, P, E)
    proto = jnp.mean(x3[:, :n_shot, :], axis=1)                      # (S, E)
    query = x3[:, n_shot:, :].reshape(Q, E)
    dist = jnp.sqrt(jnp.maximum(
        jnp.sum((query[:, None, :] - proto[None, :, :]) ** 2, axis=-1), 0.0))
    logit = -dist
    label_metric = jnp.repeat(jnp.arange(S), P - n_shot)
    logp = jax.nn.log_softmax(logit, axis=-1)
    nloss = -jnp.mean(logp[jnp.arange(Q), label_metric])
    pred = jnp.argmax(logit, axis=-1)
    prec1 = 100.0 * jnp.mean((pred == label_q).astype(jnp.float32))
    return nloss, prec1


if __name__ == "__main__":
    nb_speaker = 4
    nb_sample_per_speaker = 6
    n_shot = 2
    embedding = 32
    batch = nb_speaker * nb_sample_per_speaker

    key = jax.random.PRNGKey(0)
    x = jax.random.normal(key, (batch, embedding), dtype=jnp.float32)
    # labels: one (repeated) speaker id per sample — satisfies the module's assert
    label = jnp.repeat(jnp.arange(nb_speaker, dtype=jnp.int32),
                       nb_sample_per_speaker)

    loss, prec1 = prototypical_euclidean_loss(
        x, label,
        nb_sample_per_speaker=nb_sample_per_speaker,
        nb_speaker=nb_speaker,
        n_shot=n_shot,
        check_labels=True)   # demo only; defaults to False (no host sync)
    loss = jax.block_until_ready(loss)
    prec1 = jax.block_until_ready(prec1)

    ref_loss, ref_prec = _reference(
        x, label,
        nb_sample_per_speaker=nb_sample_per_speaker,
        nb_speaker=nb_speaker,
        n_shot=n_shot)

    assert np.allclose(float(loss), float(ref_loss), rtol=1e-3, atol=1e-3), \
        (float(loss), float(ref_loss))
    assert np.allclose(float(prec1), float(ref_prec), rtol=1e-3, atol=1e-3), \
        (float(prec1), float(ref_prec))
    print("KERNEL_OK")
</pallas_src>

<mosaic_0001>
module attributes {stable_mosaic.version = 11 : i64} {
  func.func @_proto_loss_kernel(%arg0: i32, %arg1: memref<24x32xf32, #tpu.memory_space<vmem>>, %arg2: memref<4x32xf32, #tpu.memory_space<vmem>>, %arg3: memref<1x4xf32, #tpu.memory_space<vmem>>, %arg4: memref<24x1xi32, #tpu.memory_space<vmem>>, %arg5: memref<1x1x128xf32, #tpu.memory_space<vmem>>) attributes {dimension_semantics = [#tpu.dimension_semantics<parallel>], iteration_bounds = array<i64: 1>, scalar_prefetch = 0 : i64, scratch_operands = 0 : i64, tpu.core_type = #tpu.core_type<tc>, window_params = [{transform_indices = @transform_0, window_bounds = array<i64: 24, 32>}, {pipeline_mode = #tpu.pipeline_mode<synchronous>, transform_indices = @transform_1, window_bounds = array<i64: 4, 32>}, {pipeline_mode = #tpu.pipeline_mode<synchronous>, transform_indices = @transform_2, window_bounds = array<i64: 1, 4>}, {transform_indices = @transform_3, window_bounds = array<i64: 24, 1>}, {transform_indices = @transform_4, window_bounds = array<i64: 1, 1, 128>}]} {
    %c0 = arith.constant 0 : index
    %c0_0 = arith.constant 0 : index
    %0 = vector.load %arg1[%c0, %c0_0] : memref<24x32xf32, #tpu.memory_space<vmem>>, vector<24x32xf32>
    %c0_1 = arith.constant 0 : index
    %c0_2 = arith.constant 0 : index
    %1 = vector.load %arg2[%c0_1, %c0_2] : memref<4x32xf32, #tpu.memory_space<vmem>>, vector<4x32xf32>
    %c0_3 = arith.constant 0 : index
    %c0_4 = arith.constant 0 : index
    %2 = vector.load %arg3[%c0_3, %c0_4] : memref<1x4xf32, #tpu.memory_space<vmem>>, vector<1x4xf32>
    %c0_5 = arith.constant 0 : index
    %c0_6 = arith.constant 0 : index
    %3 = vector.load %arg4[%c0_5, %c0_6] : memref<24x1xi32, #tpu.memory_space<vmem>>, vector<24x1xi32>
    %cst = arith.constant dense<0.000000e+00> : vector<24x4xf32>
    %4 = tpu.matmul %0, %1, %cst {dimension_numbers = #tpu.dot_dimension_numbers<[1], [1], [0], [0], [0, 0, 1, 0], [], []>} : vector<24x32xf32>, vector<4x32xf32>, vector<24x4xf32> -> vector<24x4xf32>
    %5 = arith.mulf %0, %0 : vector<24x32xf32>
    %cst_7 = arith.constant dense<0.000000e+00> : vector<24xf32>
    %6 = vector.multi_reduction <add>, %5, %cst_7 [1] : vector<24x32xf32> to vector<24xf32>
    %7 = vector.shape_cast %6 : vector<24xf32> to vector<24x1xf32>
    %8 = vector.broadcast %7 : vector<24x1xf32> to vector<24x4xf32>
    %9 = vector.broadcast %2 : vector<1x4xf32> to vector<24x4xf32>
    %10 = arith.addf %8, %9 : vector<24x4xf32>
    %cst_8 = arith.constant 2.000000e+00 : f32
    %11 = vector.broadcast %cst_8 : f32 to vector<24x4xf32>
    %12 = arith.mulf %11, %4 : vector<24x4xf32>
    %13 = arith.subf %10, %12 : vector<24x4xf32>
    %cst_9 = arith.constant 0.000000e+00 : f32
    %14 = vector.broadcast %cst_9 : f32 to vector<24x4xf32>
    %15 = arith.maximumf %13, %14 : vector<24x4xf32>
    %16 = math.sqrt %15 : vector<24x4xf32>
    %cst_10 = arith.constant 0.000000e+00 : f32
    %17 = vector.broadcast %cst_10 : f32 to vector<24x4xf32>
    %18 = arith.subf %17, %16 : vector<24x4xf32>
    %19 = tpu.iota {dimensions = array<i32: 0>} : vector<24x4xi32>
    %c24_i32 = arith.constant 24 : i32
    %20 = arith.muli %arg0, %c24_i32 : i32
    %21 = vector.broadcast %20 : i32 to vector<24x4xi32>
    %22 = arith.addi %19, %21 : vector<24x4xi32>
    %23 = tpu.iota {dimensions = array<i32: 1>} : vector<24x4xi32>
    %c6_i32 = arith.constant 6 : i32
    %24 = vector.broadcast %c6_i32 : i32 to vector<24x4xi32>
    %25 = arith.muli %23, %24 : vector<24x4xi32>
    %c2_i32 = arith.constant 2 : i32
    %26 = vector.broadcast %c2_i32 : i32 to vector<24x4xi32>
    %27 = arith.addi %25, %26 : vector<24x4xi32>
    %28 = arith.cmpi sge, %22, %27 : vector<24x4xi32>
    %c1_i32 = arith.constant 1 : i32
    %29 = vector.broadcast %c1_i32 : i32 to vector<24x4xi32>
    %30 = arith.addi %23, %29 : vector<24x4xi32>
    %c6_i32_11 = arith.constant 6 : i32
    %31 = vector.broadcast %c6_i32_11 : i32 to vector<24x4xi32>
    %32 = arith.muli %30, %31 : vector<24x4xi32>
    %33 = arith.cmpi slt, %22, %32 : vector<24x4xi32>
    %34 = arith.andi %28, %33 : vector<24x4xi1>
    %cst_12 = arith.constant 1.000000e+00 : f32
    %cst_13 = arith.constant 0.000000e+00 : f32
    %35 = vector.broadcast %cst_12 : f32 to vector<24x4xf32>
    %36 = vector.broadcast %cst_13 : f32 to vector<24x4xf32>
    %37 = arith.select %34, %35, %36 : vector<24x4xi1>, vector<24x4xf32>
    %cst_14 = arith.constant dense<0.000000e+00> : vector<24xf32>
    %38 = vector.multi_reduction <add>, %37, %cst_14 [1] : vector<24x4xf32> to vector<24xf32>
    %39 = vector.shape_cast %38 : vector<24xf32> to vector<24x1xf32>
    %cst_15 = arith.constant 5.000000e-01 : f32
    %40 = vector.broadcast %cst_15 : f32 to vector<24x1xf32>
    %41 = arith.cmpf ogt, %39, %40 : vector<24x1xf32>
    %cst_16 = arith.constant 0.000000e+00 : f32
    %42 = vector.broadcast %cst_16 : f32 to vector<24x4xf32>
    %43 = arith.select %34, %18, %42 : vector<24x4xi1>, vector<24x4xf32>
    %cst_17 = arith.constant dense<0.000000e+00> : vector<24xf32>
    %44 = vector.multi_reduction <add>, %43, %cst_17 [1] : vector<24x4xf32> to vector<24xf32>
    %45 = vector.shape_cast %44 : vector<24xf32> to vector<24x1xf32>
    %cst_18 = arith.constant dense<0xFF800000> : vector<24xf32>
    %46 = vector.multi_reduction <maximumf>, %18, %cst_18 [1] : vector<24x4xf32> to vector<24xf32>
    %47 = vector.shape_cast %46 : vector<24xf32> to vector<24x1xf32>
    %48 = vector.broadcast %47 : vector<24x1xf32> to vector<24x4xf32>
    %49 = arith.subf %18, %48 : vector<24x4xf32>
    %50 = math.exp %49 : vector<24x4xf32>
    %cst_19 = arith.constant dense<0.000000e+00> : vector<24xf32>
    %51 = vector.multi_reduction <add>, %50, %cst_19 [1] : vector<24x4xf32> to vector<24xf32>
    %52 = vector.shape_cast %51 : vector<24xf32> to vector<24x1xf32>
    %53 = math.log %52 : vector<24x1xf32>
    %54 = arith.addf %47, %53 : vector<24x1xf32>
    %55 = arith.subf %54, %45 : vector<24x1xf32>
    %cst_20 = arith.constant 0.000000e+00 : f32
    %56 = vector.broadcast %cst_20 : f32 to vector<24x1xf32>
    %57 = arith.select %41, %55, %56 : vector<24x1xi1>, vector<24x1xf32>
    %cst_21 = arith.constant dense<0.000000e+00> : vector<1xf32>
    %58 = vector.multi_reduction <add>, %57, %cst_21 [0] : vector<24x1xf32> to vector<1xf32>
    %59 = vector.shape_cast %58 : vector<1xf32> to vector<1x1xf32>
    %60 = vector.broadcast %47 : vector<24x1xf32> to vector<24x4xf32>
    %61 = arith.cmpf oge, %18, %60 : vector<24x4xf32>
    %c4_i32 = arith.constant 4 : i32
    %62 = vector.broadcast %c4_i32 : i32 to vector<24x4xi32>
    %63 = arith.select %61, %23, %62 : vector<24x4xi1>, vector<24x4xi32>
    %cst_22 = arith.constant dense<2147483647> : vector<24xi32>
    %64 = vector.multi_reduction <minsi>, %63, %cst_22 [1] : vector<24x4xi32> to vector<24xi32>
    %65 = vector.shape_cast %64 : vector<24xi32> to vector<24x1xi32>
    %66 = arith.cmpi eq, %65, %3 : vector<24x1xi32>
    %67 = arith.andi %41, %66 : vector<24x1xi1>
    %cst_23 = arith.constant 1.000000e+00 : f32
    %cst_24 = arith.constant 0.000000e+00 : f32
    %68 = vector.broadcast %cst_23 : f32 to vector<24x1xf32>
    %69 = vector.broadcast %cst_24 : f32 to vector<24x1xf32>
    %70 = arith.select %67, %68, %69 : vector<24x1xi1>, vector<24x1xf32>
    %cst_25 = arith.constant dense<0.000000e+00> : vector<1xf32>
    %71 = vector.multi_reduction <add>, %70, %cst_25 [0] : vector<24x1xf32> to vector<1xf32>
    %72 = vector.shape_cast %71 : vector<1xf32> to vector<1x1xf32>
    %73 = tpu.iota {dimensions = array<i32: 1>} : vector<1x128xi32>
    %c0_i32 = arith.constant 0 : i32
    %74 = vector.broadcast %c0_i32 : i32 to vector<1x128xi32>
    %75 = arith.cmpi eq, %73, %74 : vector<1x128xi32>
    %cst_26 = arith.constant 0.000000e+00 : f32
    %76 = vector.shape_cast %59 : vector<1x1xf32> to vector<1x1xf32>
    %77 = vector.broadcast %76 : vector<1x1xf32> to vector<1x128xf32>
    %78 = vector.broadcast %cst_26 : f32 to vector<1x128xf32>
    %79 = arith.select %75, %77, %78 : vector<1x128xi1>, vector<1x128xf32>
    %c1_i32_27 = arith.constant 1 : i32
    %80 = vector.broadcast %c1_i32_27 : i32 to vector<1x128xi32>
    %81 = arith.cmpi eq, %73, %80 : vector<1x128xi32>
    %cst_28 = arith.constant 0.000000e+00 : f32
    %82 = vector.shape_cast %72 : vector<1x1xf32> to vector<1x1xf32>
    %83 = vector.broadcast %82 : vector<1x1xf32> to vector<1x128xf32>
    %84 = vector.broadcast %cst_28 : f32 to vector<1x128xf32>
    %85 = arith.select %81, %83, %84 : vector<1x128xi1>, vector<1x128xf32>
    %86 = arith.addf %79, %85 : vector<1x128xf32>
    %87 = vector.shape_cast %86 : vector<1x128xf32> to vector<1x1x128xf32>
    %c0_29 = arith.constant 0 : index
    %c0_30 = arith.constant 0 : index
    %c0_31 = arith.constant 0 : index
    %88 = vector.load %arg5[%c0_29, %c0_30, %c0_31] : memref<1x1x128xf32, #tpu.memory_space<vmem>>, vector<1x1x128xf32>
    tpu.vector_store %arg5[%c0_29, %c0_30, %c0_31], %87 {strides = array<i32>} : memref<1x1x128xf32, #tpu.memory_space<vmem>>, vector<1x1x128xf32>,
    return
  }
  func.func @transform_0(%arg0: i32) -> (i32, i32) {
    %c0_i32 = arith.constant 0 : i32
    %c0_i32_0 = arith.constant 0 : i32
    return %arg0, %c0_i32 : i32, i32
  }
  func.func @transform_1(%arg0: i32) -> (i32, i32) {
    %c0_i32 = arith.constant 0 : i32
    %c0_i32_0 = arith.constant 0 : i32
    %c0_i32_1 = arith.constant 0 : i32
    return %c0_i32, %c0_i32_0 : i32, i32
  }
  func.func @transform_2(%arg0: i32) -> (i32, i32) {
    %c0_i32 = arith.constant 0 : i32
    %c0_i32_0 = arith.constant 0 : i32
    %c0_i32_1 = arith.constant 0 : i32
    return %c0_i32, %c0_i32_0 : i32, i32
  }
  func.func @transform_3(%arg0: i32) -> (i32, i32) {
    %c0_i32 = arith.constant 0 : i32
    %c0_i32_0 = arith.constant 0 : i32
    return %arg0, %c0_i32 : i32, i32
  }
  func.func @transform_4(%arg0: i32) -> (i32, i32, i32) {
    %c0_i32 = arith.constant 0 : i32
    %c0_i32_0 = arith.constant 0 : i32
    %c0_i32_1 = arith.constant 0 : i32
    return %arg0, %c0_i32, %c0_i32_0 : i32, i32, i32
  }
}

</mosaic_0001>

<bundles_post_ra>
// kernel: _proto_loss_call.1
= control target key start
LH: loop header
LB: loop body
LE: loop exit
PB: predicated region body
PF: predicated region fallthrough
CT: control target
= control target key end

     0   :  { %vm25_vm0 = vcmask 261120   ;;  %v406_v0 = vmov 0.0   ;;  %vm407_vm1 = vmmov 0   ;;  %vm199_vm5 = vcmask 31744   ;;  %s573_s1 = inlined_call_operand.vmem [shape: f32[4,32], index: 1, kind: input, shape index: {}]   ;;  %s574_s0 = inlined_call_operand.vmem [shape: f32[24,32], index: 0, kind: input, shape index: {}]   ;;  %s575_s2 = inlined_call_operand.vmem [shape: f32[1,4], index: 2, kind: input, shape index: {}]   ;;  %s576_s3 = inlined_call_operand.vmem [shape: s32[24,1], index: 3, kind: input, shape index: {}]   ;;  %s577_s4 = inlined_call_operand.vmem [shape: f32[1,1,128], index: 4, kind: output, shape index: {}]  }
   0x1   :  { %370 = vmatprep.subr.mxu0 %v406_v0  ;;  %381 = vmatprep.subr.mxu1 %v406_v0  ;;  %v20_v1 = vld [vmem:[%s573_s1] sm:$0xf]  ;;  %v18_v3 = vld [vmem:[%s574_s0 + $0x8] sm:$0xff]  ;;  %v19_v4 = vld [vmem:[%s574_s0 + $0x10] sm:$0xff]  ;;  %v172_v54 = vlaneseq }
   0x2   :  { %v17_v2 = vld [vmem:[%s574_s0] sm:$0xff]  ;;  %371 = vmatpush3.xpose.msk.msra.mxu0 %vm25_vm0, %v20_v1  ;;  %382 = vmatpush3.xpose.msk.msra.mxu1 %vm25_vm0, %v20_v1  ;;  %v119_v6 = vmul.f32 %v18_v3, %v18_v3  ;;  %v120_v7 = vmul.f32 %v19_v4, %v19_v4 }
   0x3   :  { %v118_v5 = vmul.f32 %v17_v2, %v17_v2  ;;  %372 = vmatprep.mubr.msk.f32.mxu0 %vm407_vm1, %v406_v0  ;;  %375 = vmatprep.mubr.msk.f32.mxu1 %vm407_vm1, %v406_v0  ;;  %v365_v13 = vld [vmem:[%s575_s2] ss:$0 sm:$0xff]  ;;  %v476_v56 = vand.u32 127, %v172_v54 }
   0x4   :  { %v127_v9 = vsel %vm25_vm0, %v120_v7, 0.0  ;;  %v124_v10 = vsel %vm25_vm0, %v119_v6, 0.0 }
   0x5   :  { %v121_v8 = vsel %vm25_vm0, %v118_v5, 0.0  ;;  %373 = vmatmul.mubr.msk.f32.vlgmr.msra.gmra.mxu0 %vm25_vm0, %v17_v2  ;;  %376 = vmatmul.mubr.msk.f32.vlgmr.msra.gmra.mxu1 %vm25_vm0, %v18_v3 }
   0x6   :  { %378 = vmatprep.mubr.msk.f32.mxu1 %vm407_vm1, %v406_v0  ;;  %122 = vadd.xlane.f32.xlu0 %v121_v8  ;;  %v183_v8 = vmul.u32 6, %v476_v56 }
   0x7   :  { %128 = vadd.xlane.f32.xlu1 %v127_v9  ;;  %v188_v9 = vadd.s32 1, %v476_v56 }
   0x9   :  { %379 = vmatmul.mubr.msk.f32.gmra.mxu1 %vm25_vm0, %v19_v4 }
   0xa   :  { %125 = vadd.xlane.f32.xlu0 %v124_v10 }
  0x8f   :  { %v123_v11 = vpop.xlane.xlu0 %122 }
  0x90   :  { %v129_v15 = vpop.xlane.xlu1 %128  ;;  %v136_v18 = vadd.f32 %v365_v13, %v123_v11 }
  0x91   :  { %v138_v25 = vadd.f32 %v365_v13, %v129_v15  ;;  %v173_v15 = vshrl.u32 %v172_v54, 7 }
  0x93   :  { %v126_v12 = vpop.xlane.xlu0 %125 }
  0x94   :  { %v137_v14 = vadd.f32 %v365_v13, %v126_v12  ;;  %v184_v12 = vadd.s32 2, %v183_v8  ;;  %v189_v13 = vmul.u32 6, %v188_v9 }
  0x96   :  { %vm185_vm12 = vcmp.ge.s32.totalorder %v173_v15, %v184_v12  ;;  %vm190_vm13 = vcmp.lt.s32.totalorder %v173_v15, %v189_v13 }
  0x97   :  { %vm504_vm14 = vmand %vm185_vm12, %vm190_vm13 }
  0xc5   :  { %v109_v16 = vpop.f32.mrf.mxu1  ;;  %v104_v17 = vpop.f32.mrf.mxu0 }
  0xc6   :  { %v140_v19 = vmul.f32 2.0, %v109_v16  ;;  %v139_v20 = vmul.f32 2.0, %v104_v17 }
  0xc7   :  { %v374_v21 = vpop.f32.mrf.mxu0  ;;  %v377_v22 = vpop.f32.mrf.mxu1 }
  0xc8   :  { %v143_v23 = vsub.f32 %v137_v14, %v140_v19  ;;  %v142_v24 = vsub.f32 %v136_v18, %v139_v20  ;;  %v175_v19 = vadd.s32 16, %v173_v15  ;;  %v174_v21 = vadd.s32 8, %v173_v15  ;;  %v23_v15 = vld [vmem:[%s576_s3 + $0x8] sm:$0xff] }
  0xc9   :  { %v114_v26 = vpop.f32.mrf.mxu1 }
  0xca   :  { %v146_v27 = vmax.f32 %v143_v23, 0.0  ;;  %v145_v28 = vmax.f32 %v142_v24, 0.0  ;;  %v141_v29 = vmul.f32 2.0, %v114_v26  ;;  %vm187_vm15 = vcmp.ge.s32.totalorder %v175_v19, %v184_v12 }
  0xcb   :  { %v380_v30 = vpop.f32.mrf.mxu1  ;;  %vm192_vm0 = vcmp.lt.s32.totalorder %v175_v19, %v189_v13 }
  0xcc   :  { %388 = vrsqrt.f32 %v146_v27  ;;  %v144_v31 = vsub.f32 %v138_v25, %v141_v29  ;;  %vm157_vm2 = vcmp.eq.f32.partialorder %v146_v27, inf  ;;  %v160_v36 = vand.u32 2147483648, %v146_v27 }
  0xcd   :  { %390 = vrsqrt.f32 %v145_v28  ;;  %vm159_vm3 = vcmp.eq.f32.partialorder %v146_v27, 0.0  ;;  %vm150_vm4 = vcmp.eq.f32.partialorder %v145_v28, inf  ;;  %v153_v39 = vand.u32 2147483648, %v145_v28 }
  0xce   :  { %v147_v32 = vmax.f32 %v144_v31, 0.0  ;;  %vm152_vm6 = vcmp.eq.f32.partialorder %v145_v28, 0.0  ;;  %v196_v29 = vsel %vm504_vm14, 1.0, %v406_v0 }
  0xd0   :  { %392 = vrsqrt.f32 %v147_v32  ;;  %vm164_vm7 = vcmp.eq.f32.partialorder %v147_v32, inf  ;;  %v167_v47 = vand.u32 2147483648, %v147_v32  ;;  %vm166_vm8 = vcmp.eq.f32.partialorder %v147_v32, 0.0 }
  0xd9   :  { %v389_v33 = vpop.eup %388 }
  0xda   :  { %v391_v34 = vpop.eup %390  ;;  %v156_v35 = vmul.f32 %v389_v33, %v146_v27 }
  0xdb   :  { %v149_v37 = vmul.f32 %v391_v34, %v145_v28 }
  0xdc   :  { %v158_v38 = vsel %vm157_vm2, %v146_v27, %v156_v35 }
  0xdd   :  { %v393_v40 = vpop.eup %392  ;;  %v161_v41 = vsel %vm159_vm3, %v160_v36, %v158_v38  ;;  %v151_v42 = vsel %vm150_vm4, %v145_v28, %v149_v37  ;;  %vm186_vm3 = vcmp.ge.s32.totalorder %v174_v21, %v184_v12  ;;  %vm191_vm4 = vcmp.lt.s32.totalorder %v174_v21, %v189_v13  ;;  %v24_v12 = vld [vmem:[%s576_s3 + $0x10] sm:$0xff] }
  0xde   :  { %v462_v43 = vsub.f32 0.0, %v161_v41  ;;  %v154_v44 = vsel %vm152_vm6, %v153_v39, %v151_v42  ;;  %v163_v45 = vmul.f32 %v393_v40, %v147_v32  ;;  %vm515_vm6 = vmand %vm187_vm15, %vm192_vm0 }
  0xdf   :  { %v464_v46 = vsub.f32 0.0, %v154_v44  ;;  %v198_v37 = vsel %vm515_vm6, 1.0, %v406_v0 }
  0xe0   :  { %v227_v48 = vsel %vm199_vm5, %v462_v43, -inf  ;;  %v165_v49 = vsel %vm164_vm7, %v147_v32, %v163_v45  ;;  %v200_v32 = vsel %vm199_vm5, %v196_v29, 0.0  ;;  %vm519_vm7 = vmand %vm186_vm3, %vm191_vm4  ;;  %v206_v40 = vsel %vm199_vm5, %v198_v37, 0.0 }
  0xe1   :  { %228 = vmax.xlane.f32.xlu0 %v227_v48  ;;  %v224_v50 = vsel %vm199_vm5, %v464_v46, -inf  ;;  %v168_v51 = vsel %vm166_vm8, %v167_v47, %v165_v49  ;;  %v197_v38 = vsel %vm519_vm7, 1.0, %v406_v0  ;;  %v212_v48 = vsel %vm504_vm14, %v464_v46, 0.0 }
  0xe2   :  { %225 = vmax.xlane.f32.xlu1 %v224_v50  ;;  %v470_v52 = vsub.f32 0.0, %v168_v51  ;;  %v203_v41 = vsel %vm199_vm5, %v197_v38, 0.0  ;;  %v215_v50 = vsel %vm199_vm5, %v212_v48, 0.0  ;;  %v213_v54 = vsel %vm519_vm7, %v462_v43, 0.0 }
  0xe3   :  { %vm334_vm14 = vcmask 7168   ;;  %vm348_vm3 = vcmp.eq.s32.totalorder %v476_v56, 1 }
  0xe4   :  { %v230_v53 = vsel %vm199_vm5, %v470_v52, -inf }
  0xe6   :  { %231 = vmax.xlane.f32.xlu1 %v230_v53  ;;  %v214_v53 = vsel %vm515_vm6, %v470_v52, 0.0 }
 0x16a   :  { %v474_v55 = vpop.xlane.xlu0 %228 }
 0x16b   :  { %vm275_vm9 = vcmp.ge.f32.partialorder %v462_v43, %v474_v55  ;;  %v480_v57 = vpop.xlane.xlu1 %225  ;;  %v234_v10 = vsub.f32 %v462_v43, %v474_v55  ;;  %v22_v43 = vld [vmem:[%s576_s3] sm:$0xff] }
 0x16c   :  { %vm274_vm10 = vcmp.ge.f32.partialorder %v464_v46, %v480_v57  ;;  %v278_v58 = vsel %vm275_vm9, %v476_v56, 4  ;;  %v233_v11 = vsub.f32 %v464_v46, %v480_v57  ;;  %v218_v46 = vsel %vm199_vm5, %v213_v54, 0.0 }
 0x16d   :  { %v295_v59 = vsel %vm199_vm5, %v278_v58, 2147483647  ;;  %v277_v60 = vsel %vm274_vm10, %v476_v56, 4  ;;  %v238_v14 = vmul.f32 1.442695, %v234_v10  ;;  %v221_v58 = vsel %vm199_vm5, %v214_v53, 0.0 }
 0x16e   :  { %v297_v61 = vshra.s32 %v295_v59, 16  ;;  %v280_v62 = vsel %vm199_vm5, %v277_v60, 2147483647  ;;  %v236_v16 = vmul.f32 1.442695, %v233_v11  ;;  %v296_v18 = vand.u32 65535, %v295_v59 }
 0x16f   :  { %v488_v63 = vpop.xlane.xlu1 %231  ;;  %v282_v1 = vshra.s32 %v280_v62, 16  ;;  %v281_v20 = vand.u32 65535, %v280_v62  ;;  %394 = vpow2.f32 %v238_v14  ;;  %v408_v59 = vmov 0  }
 0x170   :  { %vm276_vm11 = vcmp.ge.f32.partialorder %v470_v52, %v488_v63  ;;  %v299_v2 = vcvt.s32.f32 %v297_v61  ;;  %v235_v17 = vsub.f32 %v470_v52, %v488_v63  ;;  %396 = vpow2.f32 %v236_v16  ;;  %386 = vset.pattern.permute.xlu1 %v408_v59  ;;  %387 = vset.pattern.permute.xlu0 %v408_v59 }
 0x171   :  { %v284_v3 = vcvt.s32.f32 %v282_v1  ;;  %v279_v4 = vsel %vm276_vm11, %v476_v56, 4  ;;  %v298_v24 = vcvt.s32.f32 %v296_v18  ;;  %v283_v27 = vcvt.s32.f32 %v281_v20 }
 0x172   :  { %300 = vmin.xlane.f32.xlu1 %v299_v2  ;;  %v310_v5 = vsel %vm199_vm5, %v279_v4, 2147483647  ;;  %v240_v22 = vmul.f32 1.442695, %v235_v17 }
 0x173   :  { %285 = vmin.xlane.f32.xlu0 %v284_v3  ;;  %v312_v6 = vshra.s32 %v310_v5, 16  ;;  %v311_v28 = vand.u32 65535, %v310_v5 }
 0x174   :  { %398 = vpow2.f32 %v240_v22 }
 0x175   :  { %v314_v7 = vcvt.s32.f32 %v312_v6  ;;  %v313_v35 = vcvt.s32.f32 %v311_v28 }
 0x177   :  { %315 = vmin.xlane.f32.xlu0 %v314_v7 }
 0x17c   :  { %v395_v42 = vpop.eup %394 }
 0x17d   :  { %v397_v44 = vpop.eup %396  ;;  %v245_v45 = vsel %vm199_vm5, %v395_v42, 0.0 }
 0x17e   :  { %v242_v47 = vsel %vm199_vm5, %v397_v44, 0.0 }
 0x181   :  { %v399_v49 = vpop.eup %398 }
 0x182   :  { %v248_v51 = vsel %vm199_vm5, %v399_v49, 0.0 }
 0x1fb   :  { %v502_v23 = vpop.xlane.xlu1 %300 }
 0x1fc   :  { %v286_v26 = vpop.xlane.xlu0 %285  ;;  %vm302_vm1 = vcmp.eq.f32.partialorder %v299_v2, %v502_v23  ;;  %v307_v62 = vcvt.f32.s32 %v502_v23 }
 0x1fd   :  { %vm287_vm2 = vcmp.eq.f32.partialorder %v284_v3, %v286_v26  ;;  %v303_v30 = vsel %vm302_vm1, %v298_v24, inf  ;;  %v292_v60 = vcvt.f32.s32 %v286_v26 }
 0x1fe   :  { %v288_v31 = vsel %vm287_vm2, %v283_v27, inf  ;;  %304 = vmin.xlane.f32.xlu0 %v303_v30  ;;  %vm346_vm2 = vcmp.eq.s32.totalorder %v476_v56, 0 }
 0x1ff   :  { %289 = vmin.xlane.f32.xlu1 %v288_v31  ;;  %v293_v52 = vshll.u32 %v292_v60, 16 }
 0x200   :  { %v316_v34 = vpop.xlane.xlu0 %315 }
 0x201   :  { %vm317_vm8 = vcmp.eq.f32.partialorder %v314_v7, %v316_v34  ;;  %v322_v2 = vcvt.f32.s32 %v316_v34  ;;  %v308_v7 = vshll.u32 %v307_v62, 16 }
 0x202   :  { %v318_v39 = vsel %vm317_vm8, %v313_v35, inf  ;;  %201 = vadd.xlane.f32.xlu0 %v200_v32 }
 0x203   :  { %319 = vmin.xlane.f32.xlu1 %v318_v39  ;;  %v323_v9 = vshll.u32 %v322_v2, 16 }
 0x206   :  { %207 = vadd.xlane.f32.xlu0 %v206_v40 }
 0x207   :  { %204 = vadd.xlane.f32.xlu1 %v203_v41 }
 0x20a   :  { %246 = vadd.xlane.f32.xlu0 %v245_v45 }
 0x20b   :  { %243 = vadd.xlane.f32.xlu1 %v242_v47 }
 0x20e   :  { %216 = vadd.xlane.f32.xlu0 %v215_v50 }
 0x20f   :  { %249 = vadd.xlane.f32.xlu1 %v248_v51 }
 0x212   :  { %222 = vadd.xlane.f32.xlu0 %v221_v58 }
 0x213   :  { %219 = vadd.xlane.f32.xlu1 %v218_v46 }
 0x287   :  { %v305_v61 = vpop.xlane.xlu0 %304 }
 0x288   :  { %v290_v1 = vpop.xlane.xlu1 %289  ;;  %v306_v4 = vcvt.f32.s32 %v305_v61 }
 0x289   :  { %v291_v3 = vcvt.f32.s32 %v290_v1 }
 0x28a   :  { %v309_v11 = vadd.s32 %v308_v7, %v306_v4 }
 0x28b   :  { %v294_v5 = vadd.s32 %v293_v52, %v291_v3  ;;  %v202_v6 = vpop.xlane.xlu0 %201 }
 0x28c   :  { %vm209_vm5 = vcmp.gt.f32.partialorder %v202_v6, 0.5  ;;  %v320_v8 = vpop.xlane.xlu1 %319  ;;  %vm326_vm0 = vcmp.eq.s32.totalorder %v309_v11, %v23_v15 }
 0x28d   :  { %vm325_vm9 = vcmp.eq.s32.totalorder %v294_v5, %v22_v43  ;;  %v321_v10 = vcvt.f32.s32 %v320_v8 }
 0x28e   :  { %vm328_vm10 = vmand %vm209_vm5, %vm325_vm9 }
 0x28f   :  { %v324_v13 = vadd.s32 %v323_v9, %v321_v10  ;;  %v208_v14 = vpop.xlane.xlu0 %207  ;;  %v331_v17 = vsel %vm328_vm10, 1.0, %v406_v0 }
 0x290   :  { %vm211_vm11 = vcmp.gt.f32.partialorder %v208_v14, 0.5  ;;  %v205_v16 = vpop.xlane.xlu1 %204  ;;  %v335_v22 = vsel %vm334_vm14, %v331_v17, 0.0 }
 0x291   :  { %vm327_vm12 = vcmp.eq.s32.totalorder %v324_v13, %v24_v12  ;;  %vm210_vm13 = vcmp.gt.f32.partialorder %v205_v16, 0.5 }
 0x292   :  { %vm330_vm15 = vmand %vm211_vm11, %vm327_vm12 }
 0x293   :  { %vm329_vm1 = vmand %vm210_vm13, %vm326_vm0  ;;  %v247_v18 = vpop.xlane.xlu0 %246  ;;  %v333_v19 = vsel %vm330_vm15, 1.0, %v406_v0 }
 0x294   :  { %v332_v20 = vsel %vm329_vm1, 1.0, %v406_v0  ;;  %400 = vlog2.f32 %v247_v18  ;;  %v244_v21 = vpop.xlane.xlu1 %243  ;;  %v338_v25 = vsel %vm334_vm14, %v333_v19, 0.0 }
 0x295   :  { %v336_v23 = vsel %vm334_vm14, %v332_v20, 0.0  ;;  %402 = vlog2.f32 %v244_v21 }
 0x296   :  { %v337_v24 = vadd.f32 %v336_v23, %v335_v22 }
 0x297   :  { %v217_v0 = vpop.xlane.xlu0 %216 }
 0x298   :  { %v339_v26 = vadd.f32 %v338_v25, %v337_v24  ;;  %v250_v27 = vpop.xlane.xlu1 %249 }
 0x299   :  { %404 = vlog2.f32 %v250_v27 }
 0x29a   :  { %v340_v28 = vrot.slane %v339_v26, 4 }
 0x29b   :  { %v223_v51 = vpop.xlane.xlu0 %222 }
 0x29c   :  { %v341_v29 = vadd.f32 %v340_v28, %v339_v26  ;;  %v220_v40 = vpop.xlane.xlu1 %219 }
 0x29e   :  { %v342_v30 = vrot.slane %v341_v29, 2 }
 0x2a0   :  { %v343_v31 = vadd.f32 %v342_v30, %v341_v29 }
 0x2a1   :  { %v401_v32 = vpop.eup %400 }
 0x2a2   :  { %v403_v33 = vpop.eup %402  ;;  %v254_v34 = vmul.f32 0.6931472, %v401_v32  ;;  %v344_v35 = vrot.slane %v343_v31, 1 }
 0x2a3   :  { %v252_v36 = vmul.f32 0.6931472, %v403_v33 }
 0x2a4   :  { %v258_v37 = vadd.f32 %v254_v34, %v474_v55  ;;  %v345_v38 = vadd.f32 %v344_v35, %v343_v31 }
 0x2a5   :  { %v257_v39 = vadd.f32 %v252_v36, %v480_v57 }
 0x2a6   :  { %v405_v41 = vpop.eup %404  ;;  %v261_v42 = vsub.f32 %v258_v37, %v220_v40  ;;  %351 = vperm.xlu1 %386, %v345_v38  }
 0x2a7   :  { %v256_v44 = vmul.f32 0.6931472, %v405_v41  ;;  %v260_v45 = vsub.f32 %v257_v39, %v217_v0 }
 0x2a8   :  { %v264_v47 = vsel %vm210_vm13, %v261_v42, 0.0 }
 0x2a9   :  { %v263_v48 = vsel %vm209_vm5, %v260_v45, 0.0  ;;  %v259_v49 = vadd.f32 %v256_v44, %v488_v63 }
 0x2aa   :  { %v266_v50 = vadd.f32 %v264_v47, %v263_v48 }
 0x2ab   :  { %v262_v53 = vsub.f32 %v259_v49, %v223_v51 }
 0x2ad   :  { %v265_v55 = vsel %vm211_vm11, %v262_v53, 0.0 }
 0x2ae   :  { %v267_v54 = vadd.f32 %v266_v50, %v265_v55 }
 0x2b0   :  { %v268_v58 = vrot.slane %v267_v54, 4 }
 0x2b2   :  { %v269_v57 = vadd.f32 %v268_v58, %v267_v54 }
 0x2b4   :  { %v270_v46 = vrot.slane %v269_v57, 2 }
 0x2b6   :  { %v271_v59 = vadd.f32 %v270_v46, %v269_v57 }
 0x2b8   :  { %v272_v60 = vrot.slane %v271_v59, 1 }
 0x2ba   :  { %v273_v61 = vadd.f32 %v272_v60, %v271_v59 }
 0x2bc   :  { %v347_v1 = vsel %vm346_vm2, %v273_v61, 0.0 }
 0x321   :  { %v352_v62 = vpop.permute.xlu1 %351 }
 0x322   :  { %v354_v52 = vsel %vm348_vm3, %v352_v62, 0.0 }
 0x323   :  { %v355_v63 = vadd.f32 %v354_v52, %v347_v1 }
 0x325   :  { %356 = vst [vmem:[%s577_s4] sm:$0x1] %v355_v63 }

</bundles_post_ra>
